<compile_context>
chip_gen: v6e
topology: v6e:2x2x1
jax: 0.10.0
libtpu: 0.0.40
codegen_flags: <defaults>
</compile_context>

<pallas_src>
import jax
import jax.numpy as jnp
from jax.experimental import pallas as pl
from jax.experimental.pallas import tpu as pltpu


# -----------------------------------------------------------------------------
# Stage 0: hoisted handshaking projections (once per (B, S, H), not per pair).
# -----------------------------------------------------------------------------
def _pair_proj_kernel(seq_ref, w1_ref, w2_ref, bc_ref, a_ref, b_ref):
    x = seq_ref[...]                                                     # (S, H) f32
    a = jnp.dot(x, w1_ref[...], preferred_element_type=jnp.float32) + bc_ref[...]
    b = jnp.dot(x, w2_ref[...], preferred_element_type=jnp.float32)
    a_ref[...] = a.astype(a_ref.dtype)                                   # bf16 storage
    b_ref[...] = b.astype(b_ref.dtype)


# -----------------------------------------------------------------------------
# Stage 1: tiled dense token-pair grid + fused lane-padded output projection.
# -----------------------------------------------------------------------------
def _handshake_out_kernel(a_ref, b_ref, w_ref, bias_ref, out_ref):
    jt = pl.program_id(1)          # right-token tile index (grid axis 1)
    it = pl.program_id(2)          # left-token tile index  (grid axis 2, innermost)
    ti, h = a_ref.shape
    tj = b_ref.shape[0]
    ncols = out_ref.shape[-1]

    # Tile lies entirely below the diagonal (j < i for every pair in it): never read
    # by the wrapper's upper-triangle gather -> skip the compute, emit zeros.
    fully_masked = (jt + 1) * tj <= it * ti

    @pl.when(fully_masked)
    def _():
        out_ref[...] = jnp.zeros_like(out_ref)

    @pl.when(jnp.logical_not(fully_masked))
    def _():
        a = a_ref[...].astype(jnp.float32)                               # (ti, H)
        b = b_ref[...].astype(jnp.float32)                               # (tj, H)
        # tanh(cat([h_i, h_j]) @ Wc^T + bc) == tanh(A[i] + Bm[j])
        shaking = jnp.tanh(a[:, None, :] + b[None, :, :])                # (ti, tj, H) f32
        sh2 = shaking.reshape(ti * tj, h).astype(w_ref.dtype)            # bf16 MXU operands
        proj = jnp.dot(sh2, w_ref[...], preferred_element_type=jnp.float32)
        proj = proj + bias_ref[...]
        out_ref[...] = proj.reshape(ti, tj, ncols).astype(out_ref.dtype)


def _pick_tile(S, requested):
    if requested is not None:
        t = int(requested)
    else:
        t = S
        for cand in (64, 32, 16, 8):
            if S % cand == 0:
                t = cand
                break
    assert S % t == 0, f"tile {t} must divide seq_len {S}"
    assert t % 8 == 0 or t == S, "tile must be a multiple of 8 (sublane) or the full seq_len"
    return t


def tplinker_pallas(seq_hiddens, params, rel_size, *, ti=None, tj=None,
                    matmul_dtype=jnp.bfloat16):
    """seq_hiddens: (B, S, H) float32 encoder outputs."""
    B, S, H = seq_hiddens.shape
    R3 = rel_size * 3
    OUT = 2 + 2 * R3
    OUT_PAD = max(128, ((OUT + 127) // 128) * 128)        # lane-dense fused output width
    ti = _pick_tile(S, ti)
    tj = _pick_tile(S, tj)
    # TODO(synk): sequences whose length is not a multiple of 8 should be padded
    # (with masked positions) before calling this wrapper.

    w1, w2, bc = params["w1"], params["w2"], params["bc"]

    # --- stage 0: hoisted handshaking projections --------------------------------
    a_half, b_half = pl.pallas_call(
        _pair_proj_kernel,
        grid=(B,),
        in_specs=[
            pl.BlockSpec((None, S, H), lambda b: (b, 0, 0)),             # seq hiddens
            pl.BlockSpec((H, H), lambda b: (0, 0)),                      # W1
            pl.BlockSpec((H, H), lambda b: (0, 0)),                      # W2
            pl.BlockSpec((1, H), lambda b: (0, 0)),                      # bc
        ],
        out_specs=[
            pl.BlockSpec((None, S, H), lambda b: (b, 0, 0)),
            pl.BlockSpec((None, S, H), lambda b: (b, 0, 0)),
        ],
        out_shape=[
            jax.ShapeDtypeStruct((B, S, H), matmul_dtype),
            jax.ShapeDtypeStruct((B, S, H), matmul_dtype),
        ],
        compiler_params=pltpu.CompilerParams(dimension_semantics=("parallel",)),
    )(seq_hiddens, w1, w2, bc)

    # --- fused, lane-padded output projection weights -----------------------------
    # columns = [entity(2) | rel_head (r-major, 3) | rel_tail (r-major, 3) | zero pad]
    w_fused = jnp.concatenate([params["we"], params["wrh"], params["wrt"]], axis=1)
    b_fused = jnp.concatenate([params["be"], params["brh"], params["brt"]], axis=1)
    w_fused = jnp.pad(w_fused, ((0, 0), (0, OUT_PAD - OUT))).astype(matmul_dtype)
    b_fused = jnp.pad(b_fused, ((0, 0), (0, OUT_PAD - OUT))).astype(jnp.float32)

    ni, nj = S // ti, S // tj
    dense = pl.pallas_call(
        _handshake_out_kernel,
        grid=(B, nj, ni),      # left-token tiles innermost -> Bm tile DMA reused across sweep
        in_specs=[
            pl.BlockSpec((None, ti, H), lambda b, jt, it: (b, it, 0)),   # A  (left rows)
            pl.BlockSpec((None, tj, H), lambda b, jt, it: (b, jt, 0)),   # Bm (right rows)
            pl.BlockSpec((H, OUT_PAD), lambda b, jt, it: (0, 0)),        # fused weights
            pl.BlockSpec((1, OUT_PAD), lambda b, jt, it: (0, 0)),        # fused bias
        ],
        out_specs=pl.BlockSpec((None, ti, tj, OUT_PAD),
                               lambda b, jt, it: (b, it, jt, 0)),
        out_shape=jax.ShapeDtypeStruct((B, S, S, OUT_PAD), jnp.float32),
        compiler_params=pltpu.CompilerParams(
            dimension_semantics=("parallel", "parallel", "parallel"),
            # size ti/tj so the live buffered set stays well under 16 MiB on v7x
            vmem_limit_bytes=32 * 1024 * 1024,
        ),
    )(a_half, b_half, w_fused, b_fused)

    # --- upper-triangle gather (torch cat order) + split / reshape ----------------
    iu, ju = jnp.triu_indices(S)
    P = int(iu.shape[0])
    flat = dense[:, iu, ju, :OUT]                                        # (B, P, OUT)
    ent = flat[..., :2]
    rel_head = flat[..., 2:2 + R3].reshape(B, P, rel_size, 3).transpose(0, 2, 1, 3)
    rel_tail = flat[..., 2 + R3:OUT].reshape(B, P, rel_size, 3).transpose(0, 2, 1, 3)
    # NOTE: the (B,P,R,3)->(B,R,P,3) transpose only exists to match the torch output
    # layout; downstream code can consume the kernel's lane-dense flat layout directly.
    return ent, rel_head, rel_tail


# -----------------------------------------------------------------------------
# Deterministic parameter construction (torch nn.Linear stores weight (out, in)).
# -----------------------------------------------------------------------------
def make_params(key, hidden_size, rel_size):
    H, R = hidden_size, rel_size
    ks = jax.random.split(key, 8)
    # HandshakingKerner.combine_fc : Linear(2H -> H)
    wc = jax.random.normal(ks[0], (H, 2 * H), jnp.float32) * 0.05
    bc = jax.random.normal(ks[1], (H,), jnp.float32) * 0.05
    # entity_fc : Linear(H -> 2)
    we = jax.random.normal(ks[2], (2, H), jnp.float32) * 0.05
    be = jax.random.normal(ks[3], (2,), jnp.float32) * 0.05
    # rel_head_fcs / rel_tail_fcs : rel_size x Linear(H -> 3)
    wrh = jax.random.normal(ks[4], (R, 3, H), jnp.float32) * 0.05
    brh = jax.random.normal(ks[5], (R, 3), jnp.float32) * 0.05
    wrt = jax.random.normal(ks[6], (R, 3, H), jnp.float32) * 0.05
    brt = jax.random.normal(ks[7], (R, 3), jnp.float32) * 0.05

    params = dict(
        # split combine_fc: cat([h_i, h_j]) @ Wc^T == h_i @ Wc[:, :H]^T + h_j @ Wc[:, H:]^T
        w1=wc[:, :H].T, w2=wc[:, H:].T, bc=bc.reshape(1, H),
        we=we.T, be=be.reshape(1, 2),
        wrh=jnp.concatenate([wrh[r].T for r in range(R)], axis=1),   # (H, R*3)
        brh=brh.reshape(1, R * 3),
        wrt=jnp.concatenate([wrt[r].T for r in range(R)], axis=1),
        brt=brt.reshape(1, R * 3),
    )
    raw = dict(wc=wc, bc=bc, we=we, be=be, wrh=wrh, brh=brh, wrt=wrt, brt=brt)
    return params, raw


# -----------------------------------------------------------------------------
# Pure-JAX reference that mirrors the torch code literally (loop over `ind`).
# -----------------------------------------------------------------------------
def reference_forward(seq_hiddens, raw, rel_size):
    B, S, H = seq_hiddens.shape
    wc, bc = raw["wc"], raw["bc"]
    chunks = []
    for ind in range(S):
        h_step = seq_hiddens[:, ind, :]                                  # (B, H)
        rep = jnp.repeat(h_step[:, None, :], S - ind, axis=1)            # (B, S-ind, H)
        vis = seq_hiddens[:, ind:, :]                                    # (B, S-ind, H)
        cat = jnp.concatenate([rep, vis], axis=-1)                       # (B, S-ind, 2H)
        chunks.append(jnp.tanh(cat @ wc.T + bc))
    shaking = jnp.concatenate(chunks, axis=1)                            # (B, P, H)
    ent = shaking @ raw["we"].T + raw["be"]
    rel_head = jnp.stack([shaking @ raw["wrh"][r].T + raw["brh"][r]
                          for r in range(rel_size)], axis=1)
    rel_tail = jnp.stack([shaking @ raw["wrt"][r].T + raw["brt"][r]
                          for r in range(rel_size)], axis=1)
    return ent, rel_head, rel_tail


if __name__ == "__main__":
    B, S, H, R, VOCAB = 2, 16, 32, 4, 100
    key = jax.random.PRNGKey(0)
    k_tok, k_emb, k_typ, k_pos, k_par = jax.random.split(key, 5)

    token_ids = jax.random.randint(k_tok, (B, S), 0, VOCAB)
    token_type_ids = jnp.zeros((B, S), jnp.int32)
    attention_mask = jnp.ones((B, S), jnp.float32)

    # TODO(synk): `encoder` is an external BERT passed into __init__; replaced here
    # with a deterministic embedding stub producing (B, S, H) encoder_outputs.
    word_emb = jax.random.normal(k_emb, (VOCAB, H), jnp.float32) * 0.1
    type_emb = jax.random.normal(k_typ, (2, H), jnp.float32) * 0.1
    pos_emb = jax.random.normal(k_pos, (S, H), jnp.float32) * 0.1
    encoder_outputs = jnp.tanh(word_emb[token_ids]
                               + type_emb[token_type_ids]
                               + pos_emb[None, :, :]) * attention_mask[..., None]

    params, raw = make_params(k_par, H, R)

    # ti=tj=8 at S=16 exercises multiple pair tiles and the below-diagonal skip path.
    ent, rel_head, rel_tail = tplinker_pallas(encoder_outputs, params, R, ti=8, tj=8)
    jax.block_until_ready((ent, rel_head, rel_tail))

    ent_ref, rh_ref, rt_ref = reference_forward(encoder_outputs, raw, R)
    P = S * (S + 1) // 2
    assert ent.shape == (B, P, 2)
    assert rel_head.shape == (B, R, P, 3)
    assert rel_tail.shape == (B, R, P, 3)
    # bf16 MXU operands (f32 accumulate) -> looser tolerance vs the f32 reference.
    assert jnp.allclose(ent, ent_ref, rtol=3e-2, atol=3e-2)
    assert jnp.allclose(rel_head, rh_ref, rtol=3e-2, atol=3e-2)
    assert jnp.allclose(rel_tail, rt_ref, rtol=3e-2, atol=3e-2)

    print("KERNEL_OK")
</pallas_src>

<mosaic_0001>
module attributes {stable_mosaic.version = 11 : i64} {
  func.func @_pair_proj_kernel(%arg0: i32, %arg1: memref<1x16x32xf32, #tpu.memory_space<vmem>>, %arg2: memref<32x32xf32, #tpu.memory_space<vmem>>, %arg3: memref<32x32xf32, #tpu.memory_space<vmem>>, %arg4: memref<1x32xf32, #tpu.memory_space<vmem>>, %arg5: memref<1x16x32xbf16, #tpu.memory_space<vmem>>, %arg6: memref<1x16x32xbf16, #tpu.memory_space<vmem>>) attributes {dimension_semantics = [#tpu.dimension_semantics<parallel>], iteration_bounds = array<i64: 2>, scalar_prefetch = 0 : i64, scratch_operands = 0 : i64, tpu.core_type = #tpu.core_type<tc>, window_params = [{transform_indices = @transform_0, window_bounds = array<i64: 1, 16, 32>}, {pipeline_mode = #tpu.pipeline_mode<synchronous>, transform_indices = @transform_1, window_bounds = array<i64: 32, 32>}, {pipeline_mode = #tpu.pipeline_mode<synchronous>, transform_indices = @transform_2, window_bounds = array<i64: 32, 32>}, {pipeline_mode = #tpu.pipeline_mode<synchronous>, transform_indices = @transform_3, window_bounds = array<i64: 1, 32>}, {transform_indices = @transform_4, window_bounds = array<i64: 1, 16, 32>}, {transform_indices = @transform_5, window_bounds = array<i64: 1, 16, 32>}]} {
    %c0 = arith.constant 0 : index
    %c0_0 = arith.constant 0 : index
    %c0_1 = arith.constant 0 : index
    %0 = vector.load %arg1[%c0, %c0_0, %c0_1] : memref<1x16x32xf32, #tpu.memory_space<vmem>>, vector<1x16x32xf32>
    %1 = vector.shape_cast %0 : vector<1x16x32xf32> to vector<16x32xf32>
    %c0_2 = arith.constant 0 : index
    %c0_3 = arith.constant 0 : index
    %2 = vector.load %arg2[%c0_2, %c0_3] : memref<32x32xf32, #tpu.memory_space<vmem>>, vector<32x32xf32>
    %cst = arith.constant dense<0.000000e+00> : vector<16x32xf32>
    %3 = tpu.matmul %1, %2, %cst {dimension_numbers = #tpu.dot_dimension_numbers<[1], [0], [0], [1], [0, 0, 1, 1], [], []>} : vector<16x32xf32>, vector<32x32xf32>, vector<16x32xf32> -> vector<16x32xf32>
    %c0_4 = arith.constant 0 : index
    %c0_5 = arith.constant 0 : index
    %4 = vector.load %arg4[%c0_4, %c0_5] : memref<1x32xf32, #tpu.memory_space<vmem>>, vector<1x32xf32>
    %5 = vector.broadcast %4 : vector<1x32xf32> to vector<16x32xf32>
    %6 = arith.addf %3, %5 : vector<16x32xf32>
    %c0_6 = arith.constant 0 : index
    %c0_7 = arith.constant 0 : index
    %7 = vector.load %arg3[%c0_6, %c0_7] : memref<32x32xf32, #tpu.memory_space<vmem>>, vector<32x32xf32>
    %cst_8 = arith.constant dense<0.000000e+00> : vector<16x32xf32>
    %8 = tpu.matmul %1, %7, %cst_8 {dimension_numbers = #tpu.dot_dimension_numbers<[1], [0], [0], [1], [0, 0, 1, 1], [], []>} : vector<16x32xf32>, vector<32x32xf32>, vector<16x32xf32> -> vector<16x32xf32>
    %9 = arith.truncf %6 : vector<16x32xf32> to vector<16x32xbf16>
    %c0_9 = arith.constant 0 : index
    %c0_10 = arith.constant 0 : index
    %c0_11 = arith.constant 0 : index
    %10 = vector.load %arg5[%c0_9, %c0_10, %c0_11] : memref<1x16x32xbf16, #tpu.memory_space<vmem>>, vector<1x16x32xbf16>
    %11 = vector.shape_cast %10 : vector<1x16x32xbf16> to vector<16x32xbf16>
    %12 = vector.shape_cast %9 : vector<16x32xbf16> to vector<1x16x32xbf16>
    tpu.vector_store %arg5[%c0_9, %c0_10, %c0_11], %12 {strides = array<i32>} : memref<1x16x32xbf16, #tpu.memory_space<vmem>>, vector<1x16x32xbf16>,
    %13 = arith.truncf %8 : vector<16x32xf32> to vector<16x32xbf16>
    %c0_12 = arith.constant 0 : index
    %c0_13 = arith.constant 0 : index
    %c0_14 = arith.constant 0 : index
    %14 = vector.load %arg6[%c0_12, %c0_13, %c0_14] : memref<1x16x32xbf16, #tpu.memory_space<vmem>>, vector<1x16x32xbf16>
    %15 = vector.shape_cast %14 : vector<1x16x32xbf16> to vector<16x32xbf16>
    %16 = vector.shape_cast %13 : vector<16x32xbf16> to vector<1x16x32xbf16>
    tpu.vector_store %arg6[%c0_12, %c0_13, %c0_14], %16 {strides = array<i32>} : memref<1x16x32xbf16, #tpu.memory_space<vmem>>, vector<1x16x32xbf16>,
    return
  }
  func.func @transform_0(%arg0: i32) -> (i32, i32, i32) {
    %c0_i32 = arith.constant 0 : i32
    %c0_i32_0 = arith.constant 0 : i32
    %c0_i32_1 = arith.constant 0 : i32
    return %arg0, %c0_i32, %c0_i32_0 : i32, i32, i32
  }
  func.func @transform_1(%arg0: i32) -> (i32, i32) {
    %c0_i32 = arith.constant 0 : i32
    %c0_i32_0 = arith.constant 0 : i32
    %c0_i32_1 = arith.constant 0 : i32
    return %c0_i32, %c0_i32_0 : i32, i32
  }
  func.func @transform_2(%arg0: i32) -> (i32, i32) {
    %c0_i32 = arith.constant 0 : i32
    %c0_i32_0 = arith.constant 0 : i32
    %c0_i32_1 = arith.constant 0 : i32
    return %c0_i32, %c0_i32_0 : i32, i32
  }
  func.func @transform_3(%arg0: i32) -> (i32, i32) {
    %c0_i32 = arith.constant 0 : i32
    %c0_i32_0 = arith.constant 0 : i32
    %c0_i32_1 = arith.constant 0 : i32
    return %c0_i32, %c0_i32_0 : i32, i32
  }
  func.func @transform_4(%arg0: i32) -> (i32, i32, i32) {
    %c0_i32 = arith.constant 0 : i32
    %c0_i32_0 = arith.constant 0 : i32
    %c0_i32_1 = arith.constant 0 : i32
    return %arg0, %c0_i32, %c0_i32_0 : i32, i32, i32
  }
  func.func @transform_5(%arg0: i32) -> (i32, i32, i32) {
    %c0_i32 = arith.constant 0 : i32
    %c0_i32_0 = arith.constant 0 : i32
    %c0_i32_1 = arith.constant 0 : i32
    return %arg0, %c0_i32, %c0_i32_0 : i32, i32, i32
  }
}

</mosaic_0001>

<bundles_post_ra>
// kernel: tpu_custom_call.1
= control target key start
LH: loop header
LB: loop body
LE: loop exit
PB: predicated region body
PF: predicated region fallthrough
CT: control target
= control target key end

     0   :  { %11 = vsyncpa [#allocation3], 0  ;;  %s1248_s0 = inlined_call_operand.hbm [shape: f32[2,16,32], index: 0, kind: input, shape index: {}]   ;;  %s1249_s1 = inlined_call_operand.hbm [shape: f32[32,32], index: 1, kind: input, shape index: {}]   ;;  %s1250_s2 = inlined_call_operand.hbm [shape: f32[32,32], index: 2, kind: input, shape index: {}]   ;;  %s1251_s3 = inlined_call_operand.vmem [shape: f32[1,32], index: 3, kind: input, shape index: {}]   ;;  %s1252_s4 = inlined_call_operand.hbm [shape: bf16[2,16,32], index: 4, kind: output, shape index: {0}]   ;;  %s1253_s5 = inlined_call_operand.hbm [shape: bf16[2,16,32], index: 5, kind: output, shape index: {1}]  }
   0x1   :  { %13 = vsyncpa [#allocation3 + $0x1], 0 }
   0x2   :  { %14 = vsyncpa [#allocation6], 0 }
   0x3   :  { %15 = vsyncpa [#allocation4], 0 }
   0x4   :  { %17 = vsyncpa [#allocation4 + $0x1], 0 }
   0x5   :  { %18 = vsyncpa [#allocation10], 0 }
   0x6   :  { %20 = vsyncpa [#allocation10 + $0x1], 0  ;;  %s1004_s18 = smov 0   ;;  %s1006_s19 = smov 0  }
   0x7   :  { %s1008_s20 = smov 0   ;;  %s1010_s21 = smov 0  }
   0x8 LB: > { %s1025_s22 = sadd.s32 4294967295, %s963_s21   ;;  %s637_s23 = sadd.s32 4294967294, %s963_s21   ;;  %s963_s21 = sphi %s1010_s21, %s1276_s21   ;;  %s959_s20 = sphi %s1008_s20, %s1275_s20   ;;  %s955_s19 = sphi %s1006_s19, %s1274_s19   ;;  %s951_s18 = sphi %s1004_s18, %s1273_s18  }
   0x9   : > { %p46_p0 = scmp.ne.s32.totalorder %s955_s19, %s951_s18  ;;  %p1254_p1 = scmp.eq.s32.totalorder %s1025_s22, 0 }
   0xa   : > { %p133_p2 = scmp.eq.s32.totalorder %s1025_s22, 1  ;;  %p139_p3 = scmp.eq.s32.totalorder %s637_s23, 1 }
   0xb   : > { %p1034_p4 = por %p1254_p1, %p46_p0  ;;  %p638_p5 = scmp.ge.s32.totalorder %s963_s21, 1 }
   0xc   : > { %p1039_p6 = por %p139_p3, %p46_p0  ;;  %p172_p7 = scmp.lt.s32.totalorder %s963_s21, 3 }
   0xd   : > { %s1259_s24 = scalar_select %p1034_p4, 1, 0 }
   0xe   : > { %s1260_s25 = scalar_select %p1039_p6, 1, 0 }
   0xf   : > { %p1044_p8 = pnand %p638_p5, %p172_p7  ;;  %s965_s27 = smov [#allocation5]  }
  0x10   : > { %s184_s28 = sshll.u32 %s965_s27, 4  ;;  %s966_s30 = smov [#allocation7]   ;;  %s185_s28 = int_to_ptr.vmem [resolvable:$true] %s184_s28 }
  0x11   : > { %s1261_s26 = scalar_select %p1044_p8, 1, 0 }
  0x12   : > { %p723_p9 = pneg %p1044_p8  ;;  %s197_s6 = sshll.u32 %s966_s30, 4  ;;  %s198_s6 = int_to_ptr.vmem [resolvable:$true] %s197_s6 }
  0x13   : > { %s796_s7 = scalar_lea.vmem %s185_s28, 512  ;;  %p804_p5 = scmp.lt.s32.totalorder %s185_s28, %s185_s28 }
  0x14   : > { %p1053_p11 = pnand %p723_p9, %p1254_p1  ;;  %p797_p13 = scmp.ne.s32.totalorder %s185_s28, %s796_s7 }
  0x15   : > { %p805_p7 = scmp.lt.s32.totalorder %s796_s7, %s796_s7 }
  0x16   : > { %p787_p12 = pneg %p1053_p11 }
  0x17   : > { %p806_p10 = por %p805_p7, %p804_p5 }
  0x18   : > { %p799_p0 = pnand %p797_p13, %p787_p12 }
  0x1a   : > { %p800_p3 = pneg %p799_p0 }
  0x1c   : > { %p807_p9 = pnand %p806_p10, %p800_p3 }
  0x1e   : > { %810 = shalt.err (!%p807_p9)
}
  0x1f   : > { %s1255_s8 = smov 128   ;;  %s968_s9 = smov 8  }
  0x20   : > { %726 = dma.hbm_to_vmem [thread:$0]  (!%p1053_p11), %s1249_s1, 512, %s185_s28, [#allocation6], %s1255_s8, %s1255_s8, %s968_s9  }
  0x21   : > { %s822_s12 = scalar_lea.vmem %s198_s6, 512  ;;  %p830_p10 = scmp.lt.s32.totalorder %s198_s6, %s198_s6 }
  0x22   : > { %p823_p13 = scmp.ne.s32.totalorder %s198_s6, %s822_s12  ;;  %p831_p3 = scmp.lt.s32.totalorder %s822_s12, %s822_s12 }
  0x24   : > { %p825_p0 = pnand %p823_p13, %p787_p12  ;;  %p832_p7 = por %p831_p3, %p830_p10 }
  0x26   : > { %p826_p5 = pneg %p825_p0 }
  0x28   : > { %p833_p9 = pnand %p832_p7, %p826_p5 }
  0x2a   : > { %836 = shalt.err (!%p833_p9)
}
  0x2b   : > { %729 = dma.hbm_to_vmem [thread:$0]  (!%p1053_p11), %s1250_s2, 512, %s198_s6, [#allocation6], %s1255_s8, %s1255_s8, %s968_s9  }
  0x2c   : > { %s1082_s15 = sadd.s32 1, %s963_s21   ;;  %s33_s16 = sadd.s32 1, %s959_s20 }
  0x2d   : > { %s30_s17 = ssub.s32 %s963_s21, %s1082_s15  ;;  %p40_p12 = scmp.ne.s32.totalorder %s959_s20, %s955_s19 }
  0x2e   : > { %p31_p13 = scmp.eq.s32.totalorder %s30_s17, 0  ;;  %p41_p0 = scmp.eq.s32.totalorder %s963_s21, 0 }
  0x2f   : > { %p1092_p5 = por %p133_p2, %p40_p12  ;;  %p743_p10 = scmp.lt.s32.totalorder %s963_s21, 2 }
  0x30   : > { %s1098_s27 = scalar_select %p31_p13, %s959_s20, %s33_s16  }
  0x31   : > { %s1263_s23 = scalar_select %p1092_p5, 1, 0 }
  0x32   : > { %p42_p3 = por %p41_p0, %p40_p12  ;;  %s214_s28 = sand.u32 1, %s959_s20  }
  0x33   : > { %s642_s29 = sshll.u32 %s214_s28, 4  ;;  %s668_s30 = sshll.u32 %s963_s21, 8 }
  0x34   : > { %s1105_s10 = scalar_lea.hbm %s1248_s0, %s668_s30  ;;  %s218_s11 = scalar_lea.vmem [#allocation2], %s642_s29 }
  0x35   : > { %s225_s12 = sshll.u32 %s218_s11, 4  ;;  %p1109_p2 = pnand %p743_p10, %p42_p3  ;;  %s1107_s12 = int_to_ptr.vmem [resolvable:$true] %s225_s12 }
  0x36   : > { %s1113_s14 = scalar_lea.sflag [#allocation3], %s214_s28  ;;  %s837_s16 = scalar_lea.hbm %s1105_s10, 256 }
  0x37   : > { %p838_p11 = scmp.ne.s32.totalorder %s1105_s10, %s837_s16  ;;  %p839_p7 = pneg %p1109_p2 }
  0x38   : > { %s842_s29 = scalar_lea.hbm %s1248_s0, 512  ;;  %p843_p13 = scmp.lt.s32.totalorder %s1105_s10, %s1248_s0 }
  0x39   : > { %p840_p9 = pnand %p839_p7, %p838_p11  ;;  %p844_p0 = scmp.lt.s32.totalorder %s842_s29, %s837_s16 }
  0x3b   : > { %p841_p12 = pneg %p840_p9  ;;  %p845_p10 = por %p844_p0, %p843_p13 }
  0x3d   : > { %p846_p3 = pnand %p845_p10, %p841_p12 }
  0x3f   : > { %849 = shalt.err (!%p846_p3)
}
  0x40   : > { %s850_s28 = scalar_lea.vmem %s1107_s12, 256  ;;  %s969_s11 = smov [#allocation2]  }
  0x41   : > { %p851_p1 = scmp.ne.s32.totalorder %s1107_s12, %s850_s28  ;;  %s855_s8 = sshll.u32 %s969_s11, 4  ;;  %s856_s8 = int_to_ptr.vmem [resolvable:$false] %s855_s8 }
  0x42   : > { %s857_s17 = scalar_lea.vmem %s856_s8, 512  ;;  %p858_p9 = scmp.lt.s32.totalorder %s1107_s12, %s856_s8 }
  0x43   : > { %p853_p6 = pnand %p851_p1, %p839_p7  ;;  %p859_p5 = scmp.lt.s32.totalorder %s857_s17, %s850_s28 }
  0x45   : > { %p854_p11 = pneg %p853_p6  ;;  %p860_p4 = por %p859_p5, %p858_p9 }
  0x47   : > { %p861_p8 = pnand %p860_p4, %p854_p11 }
  0x49   : > { %864 = shalt.err (!%p861_p8)
}
  0x4a   : > { %s1265_s16 = smov 128   ;;  %p1266_p1 = scmp.ne.s32.totalorder %s1261_s26, 0 }
  0x4b   : > { %733 = dma.hbm_to_vmem [thread:$0]  (!%p1109_p2), %s1105_s10, 256, %s1107_s12, %s1113_s14, %s1265_s16, %s1265_s16, %s968_s9  }
  0x4c   : > { %237 = sbr.rel (%p1266_p1) target bundleno = 329 (0x149), region = 36  ;;  %s1140_s30 = sand.u32 (!%p1266_p1), 1, %s955_s19  }
  0x4d   : > { %s646_s8 = sshll.u32 (!%p1266_p1), %s1140_s30, 4  ;;  %s240_s29 = scalar_lea.sflag (!%p1266_p1), [#allocation3], %s1140_s30 }
  0x4e   : > { %s243_s6 = scalar_lea.vmem (!%p1266_p1), [#allocation2], %s646_s8  ;;  %p1267_p4 = scmp.ne.s32.totalorder (!%p1266_p1), %s1259_s24, 0 }
  0x51   : > { %934 = dma.done.wait (%p1267_p4), %s240_s29, 256  }
  0x52   : > { %936 = vsyncadd (%p1267_p4), %s240_s29, 4294967040  ;;  %p1268_p6 = scmp.eq.s32.totalorder %s1025_s22, 0 }
  0x54   : > { %938 = dma.done.wait (%p1268_p6), [#allocation6], 1024   ;;  %p1269_p8 = pmov %p1268_p6 }
  0x55   : > { %v288_v0 = vld [vmem:[#allocation5 + $0x18] sm:$0xff]  ;;  %v287_v2 = vld [vmem:[#allocation5 + $0x10] sm:$0xff]  ;;  %v286_v4 = vld [vmem:[#allocation5 + $0x8] sm:$0xff]  ;;  %vm296_vm0 = vcmask 261120   ;;  %s649_s24 = sshll.u32 %s1140_s30, 3  ;;  %vm465_vm1 = vcmask 257024  }
  0x56   : > { %940 = vsyncadd (%p1269_p8), [#allocation6], 4294966272  ;;  %v381_v1 = vld [vmem:[#allocation7 + $0x18] sm:$0xff]  ;;  %687 = vmatprep.subr.mxu0 %v288_v0  ;;  %v380_v3 = vld [vmem:[#allocation7 + $0x10] sm:$0xff]  ;;  %s282_s10 = scalar_lea.vmem [#allocation9], %s649_s24  ;;  %s673_s13 = sshll.u32 %s1025_s22, 7 }
  0x57   : > { %698 = vmatprep.subr.mxu1 %v381_v1  ;;  %688 = vmatpush3.msra.mxu0 %v288_v0  ;;  %v379_v5 = vld [vmem:[#allocation7 + $0x8] sm:$0xff]  ;;  %v285_v6 = vld [vmem:[#allocation5] sm:$0xff]  ;;  %s513_s12 = sshll.u32 %s282_s10, 4  ;;  %s1157_s14 = scalar_lea.vmem [#allocation8], %s649_s24  ;;  %s1160_s12 = int_to_ptr.vmem [resolvable:$true] %s513_s12 }
  0x58   : > { %699 = vmatpush3.msra.mxu1 %v381_v1  ;;  %689 = vmatprep.subr.mxu0 %v287_v2  ;;  %v378_v7 = vld [vmem:[#allocation7] sm:$0xff]  ;;  %v284_v9 = vld [vmem:[%s243_s6 + $0x8] sm:$0xff]  ;;  %s497_s7 = sshll.u32 %s1157_s14, 4  ;;  %s1166_s11 = scalar_lea.hbm %s1253_s5, %s673_s13  ;;  %s1176_s7 = int_to_ptr.vmem [resolvable:$true] %s497_s7 }
  0x59   : > { %700 = vmatprep.subr.mxu1 %v380_v3  ;;  %690 = vmatpush3.msra.mxu0 %v287_v2  ;;  %v283_v8 = vld [vmem:[%s243_s6] sm:$0xff]  ;;  %s1174_s8 = scalar_lea.hbm %s1252_s4, %s673_s13  ;;  %s484_s29 = scalar_lea.sflag [#allocation10], %s1140_s30 }
  0x5a   : > { %701 = vmatpush3.msra.mxu1 %v380_v3  ;;  %691 = vmatprep.subr.mxu0 %v286_v4  ;;  %v651_v10 = vld [vmem:[%s1251_s3] ss:$0 sm:$0xff]  ;;  %s865_s6 = scalar_lea.vmem %s1160_s12, 128  ;;  %p1270_p2 = scmp.ne.s32.totalorder %s1263_s23, 0 }
  0x5b   : > { %702 = vmatprep.subr.mxu1 %v379_v5  ;;  %692 = vmatpush3.msra.mxu0 %v286_v4  ;;  %p866_p5 = scmp.ne.s32.totalorder %s1160_s12, %s865_s6  ;;  %s970_s24 = smov [#allocation9]  }
  0x5c   : > { %703 = vmatpush3.msra.mxu1 %v379_v5  ;;  %693 = vmatprep.subr.mxu0 %v285_v6  ;;  %s869_s26 = sshll.u32 %s970_s24, 4  ;;  %s870_s26 = int_to_ptr.vmem [resolvable:$false] %s869_s26 }
  0x5d   : > { %704 = vmatprep.subr.mxu1 %v378_v7  ;;  %694 = vmatpush3.msra.mxu0 %v285_v6  ;;  %p867_p7 = pnand %p866_p5, %p1270_p2  ;;  %s871_s9 = scalar_lea.vmem %s870_s26, 256 }
  0x5e   : > { %695 = vmatprep.mubr.msk.f32.mxu0 %vm296_vm0, %v283_v8  ;;  %705 = vmatpush3.msra.mxu1 %v378_v7  ;;  %p872_p13 = scmp.lt.s32.totalorder %s1160_s12, %s870_s26  ;;  %p873_p0 = scmp.lt.s32.totalorder %s871_s9, %s865_s6 }
  0x5f   : > { %706 = vmatprep.mubr.msk.f32.mxu1 %vm296_vm0, %v283_v8  ;;  %696 = vmatmul.mubr.msk.f32.vlgmr.msra.gmra.mxu0 %vm296_vm0, %v284_v9  ;;  %p868_p12 = pneg %p867_p7 }
  0x60   : > { %707 = vmatmul.mubr.msk.f32.vlgmr.msra.gmra.mxu1 %vm296_vm0, %v284_v9  ;;  %p874_p10 = por %p873_p0, %p872_p13 }
  0x62   : > { %p875_p3 = pnand %p874_p10, %p868_p12 }
 0x11f   : > { %v697_v11 = vpop.f32.mrf.mxu0 }
 0x120   : > { %v708_v12 = vpop.f32.mrf.mxu1  ;;  %v375_v13 = vadd.f32 %v697_v11, %v651_v10 }
 0x121   : > { %v672_v14 = vpack.c.bf16 %v708_v12, %v708_v12  ;;  %v369_v15 = vpop.f32.mrf.mxu0 }
 0x122   : > { %v448_v16 = vpop.f32.mrf.mxu1  ;;  %v670_v17 = vpack.c.bf16 %v375_v13, %v375_v13  ;;  %v370_v18 = vadd.f32 %v651_v10, %v369_v15 }
 0x123   : > { %477 = vst.msk [vmem:[%s282_s10 + $0x4] sm:$0xf] %vm465_vm1, %v672_v14  ;;  %v671_v19 = vpack.c.bf16 %v448_v16, %v448_v16 }
 0x124   : > { %467 = vst.msk [vmem:[%s1157_s14 + $0x4] sm:$0xf] %vm465_vm1, %v670_v17  ;;  %v669_v20 = vpack.c.bf16 %v370_v18, %v370_v18 }
 0x125   : > { %476 = vst.msk [vmem:[%s282_s10] sm:$0xf] %vm465_vm1, %v671_v19 }
 0x126   : > { %878 = shalt.err (!%p875_p3)
}
 0x127   : > { %s879_s10 = scalar_lea.hbm %s1166_s11, 128  ;;  %s883_s28 = scalar_lea.hbm %s1253_s5, 256 }
 0x128   : > { %p880_p11 = scmp.ne.s32.totalorder %s1166_s11, %s879_s10  ;;  %p884_p4 = scmp.lt.s32.totalorder %s1166_s11, %s1253_s5 }
 0x129   : > { %p885_p6 = scmp.lt.s32.totalorder %s883_s28, %s879_s10 }
 0x12a   : > { %p881_p9 = pnand %p880_p11, %p1270_p2 }
 0x12b   : > { %p886_p8 = por %p885_p6, %p884_p4 }
 0x12c   : > { %p882_p1 = pneg %p881_p9 }
 0x12e   : > { %p887_p5 = pnand %p886_p8, %p882_p1 }
 0x130   : > { %890 = shalt.err (!%p887_p5)
}
 0x131   : > { %s971_s6 = smov 64   ;;  %s972_s24 = smov 4   ;;  %466 = vst.msk [vmem:[%s1157_s14] sm:$0xf] %vm465_vm1, %v669_v20 }
 0x132   : > { %720 = dma.vmem_to_hbm [thread:$0]  (%p1270_p2), %s1160_s12, 128, %s1166_s11, %s484_s29, %s971_s6, %s971_s6, %s972_s24  }
 0x133   : > { %s479_s26 = scalar_lea.sflag [#allocation4], %s1140_s30  ;;  %s891_s9 = scalar_lea.vmem %s1176_s7, 128 }
 0x134   : > { %p892_p7 = scmp.ne.s32.totalorder %s1176_s7, %s891_s9  ;;  %s973_s10 = smov [#allocation8]  }
 0x135   : > { %s895_s13 = sshll.u32 %s973_s10, 4  ;;  %s896_s13 = int_to_ptr.vmem [resolvable:$false] %s895_s13 }
 0x136   : > { %p893_p12 = pnand %p892_p7, %p1270_p2  ;;  %s897_s22 = scalar_lea.vmem %s896_s13, 256 }
 0x137   : > { %p898_p0 = scmp.lt.s32.totalorder %s1176_s7, %s896_s13  ;;  %p899_p10 = scmp.lt.s32.totalorder %s897_s22, %s891_s9 }
 0x138   : > { %p894_p13 = pneg %p893_p12 }
 0x139   : > { %p900_p3 = por %p899_p10, %p898_p0 }
 0x13b   : > { %p901_p11 = pnand %p900_p3, %p894_p13 }
 0x13d   : > { %904 = shalt.err (!%p901_p11)
}
 0x13e   : > { %s905_s12 = scalar_lea.hbm %s1174_s8, 128  ;;  %s909_s11 = scalar_lea.hbm %s1252_s4, 256 }
 0x13f   : > { %p906_p9 = scmp.ne.s32.totalorder %s1174_s8, %s905_s12  ;;  %p910_p6 = scmp.lt.s32.totalorder %s1174_s8, %s1252_s4 }
 0x140   : > { %p911_p8 = scmp.lt.s32.totalorder %s909_s11, %s905_s12 }
 0x141   : > { %p907_p1 = pnand %p906_p9, %p1270_p2 }
 0x142   : > { %p912_p5 = por %p911_p8, %p910_p6 }
 0x143   : > { %p908_p4 = pneg %p907_p1 }
 0x145   : > { %p913_p7 = pnand %p912_p5, %p908_p4 }
 0x147   : > { %916 = shalt.err (!%p913_p7)
}
 0x148   : > { %719 = dma.vmem_to_hbm [thread:$0]  (%p1270_p2), %s1176_s7, 128, %s1174_s8, %s479_s26, %s971_s6, %s971_s6, %s972_s24  }
 0x149 PF: > { %s528_s17 = sand.u32 1, %s951_s18   ;;  %p1271_p12 = scmp.ne.s32.totalorder %s1260_s25, 0 }
 0x14a   : > { %p1272_p13 = scmp.ge.s32.totalorder %s963_s21, 2  ;;  %s529_s16 = scalar_lea.sflag [#allocation4], %s528_s17 }
 0x14c   : > { %p735_p0 = pnand %p1272_p13, %p1271_p12 }
 0x14e   : > { %p736_p10 = pneg %p735_p0 }
 0x150   : > { %942 = dma.done.wait (%p736_p10), %s529_s16, 128  }
 0x151   : > { %944 = vsyncadd (%p736_p10), %s529_s16, 4294967168  ;;  %s538_s9 = scalar_lea.sflag [#allocation10], %s528_s17 }
 0x152   : > { %946 = dma.done.wait (%p736_p10), %s538_s9, 128  }
 0x153   : > { %948 = vsyncadd (%p736_p10), %s538_s9, 4294967168  ;;  %p23_p2 = scmp.ge.s32.totalorder %s1082_s15, 4   ;;  %s1273_s18 = smov %s955_s19 }
 0x154   : > { %s1274_s19 = smov %s959_s20  ;;  %s1275_s20 = smov %s1098_s27 }
 0x155   : > { %s1276_s21 = smov %s1082_s15  ;;  %25 = sbr.rel (!%p23_p2) target bundleno = 8 (0x8), region = 106 }
 0x15a   :  { %543 = vsyncpa [#allocation3], 1 }
 0x15b   :  { %545 = vsyncpa [#allocation3 + $0x1], 1 }
 0x15c   :  { %546 = vsyncpa [#allocation6], 1 }
 0x15d   :  { %547 = vsyncpa [#allocation4], 1 }
 0x15e   :  { %549 = vsyncpa [#allocation4 + $0x1], 1 }
 0x15f   :  { %550 = vsyncpa [#allocation10], 1 }
 0x160   :  { %552 = vsyncpa [#allocation10 + $0x1], 1 }

</bundles_post_ra>
